<compile_context>
chip_gen: v5e
topology: v5e:2x2
jax: 0.10.0
libtpu: 0.0.40
codegen_flags: <defaults>
</compile_context>

<pallas_src>
import functools

import jax
import jax.numpy as jnp
from jax.experimental import pallas as pl
from jax.experimental.pallas import tpu as pltpu


# ----------------------------- helpers ------------------------------------- #

def _round_up(x, m):
    return (x + m - 1) // m * m


def _pad2(a, rows, cols):
    return jnp.pad(a, ((0, rows - a.shape[0]), (0, cols - a.shape[1])))


def _pick_tile(n, pref):
    """Largest multiple of 128 <= pref that divides n (n is a multiple of 128)."""
    pref = max(128, (pref // 128) * 128)
    t = min(pref, n)
    while n % t != 0:
        t -= 128
    return t


# ----------------------------- streamed kernels ----------------------------- #

def gin_conv_kernel(tk, a_ref, x_ref, w1_ref, b1_ref, w2_ref, b2_ref,
                    o_ref, acc_ref):
    """Tiled fused GINConv: neighbor-sum accumulation + 2-layer MLP epilogue.

    Grid: (node-row tiles i, neighbor/K tiles k).  A is streamed per (i, k)
    tile; x is VMEM-resident (constant index_map) and sliced per K inside the
    kernel.  The (1+eps) self term is folded into A's diagonal and eval-BN is
    folded into (w2, b2) by the wrapper.
    """
    k = pl.program_id(1)

    @pl.when(k == 0)
    def _init():
        acc_ref[...] = jnp.zeros_like(acc_ref)

    start = pl.multiple_of(k * tk, tk)
    acc_ref[...] += jnp.dot(a_ref[...], x_ref[pl.ds(start, tk), :],
                            preferred_element_type=jnp.float32)

    @pl.when(k == pl.num_programs(1) - 1)
    def _finalize():
        # NOTE: the f32 aggregation is downcast to bf16 before the w1 matmul
        # (MXU operand); documented precision tradeoff, fine for this model.
        h = acc_ref[...].astype(jnp.bfloat16)
        # hidden block: Linear -> ReLU (BN already folded into w2/b2)
        h1 = jnp.dot(h, w1_ref[...],
                     preferred_element_type=jnp.float32) + b1_ref[...]
        h1 = jnp.maximum(h1, 0.0)
        # output block: Linear with bias, no activation
        out = jnp.dot(h1.astype(jnp.bfloat16), w2_ref[...],
                      preferred_element_type=jnp.float32) + b2_ref[...]
        o_ref[...] = out.astype(o_ref.dtype)


def pool_mlp_kernel(num_classes, p_ref, x_ref, w1_ref, b1_ref, w2_ref, b2_ref,
                    o_ref, acc_ref):
    """Tiled global_add_pool (over node tiles) + final MLP + log_softmax."""
    k = pl.program_id(0)

    @pl.when(k == 0)
    def _init():
        acc_ref[...] = jnp.zeros_like(acc_ref)

    # pooled[g] += sum_{n in this node tile} P[g, n] * x[n]
    acc_ref[...] += jnp.dot(p_ref[...], x_ref[...],
                            preferred_element_type=jnp.float32)

    @pl.when(k == pl.num_programs(0) - 1)
    def _finalize():
        # Linear -> ReLU
        h = jnp.dot(acc_ref[...].astype(jnp.bfloat16), w1_ref[...],
                    preferred_element_type=jnp.float32) + b1_ref[...]
        h = jnp.maximum(h, 0.0)
        # Linear
        logits = jnp.dot(h.astype(jnp.bfloat16), w2_ref[...],
                         preferred_element_type=jnp.float32) + b2_ref[...]
        # mask padded class lanes before log_softmax
        col = jax.lax.broadcasted_iota(jnp.int32, logits.shape, 1)
        logits = jnp.where(col < num_classes, logits, jnp.float32(-1e30))
        m = jnp.max(logits, axis=-1, keepdims=True)
        z = logits - m
        lse = jnp.log(jnp.sum(jnp.exp(z), axis=-1, keepdims=True))
        o_ref[...] = z - lse


# ----------------------------- fused resident kernel ------------------------ #

def fused_gin_kernel(num_classes, gnn_layers, *refs):
    """Whole-model fused kernel: all GIN layers + pooling + final MLP.

    Everything (A, x, P, all weights) is VMEM-resident; A is read from HBM
    exactly once for the whole forward pass and intermediate x never round
    trips to HBM.  Used only when the problem fits in VMEM.
    """
    a = refs[0][...]          # bf16, (1+eps) self term folded on diagonal
    h = refs[1][...]          # bf16 node features
    p = refs[2][...]          # bf16 pooling matrix
    o_ref = refs[-1]
    idx = 3
    for _ in range(gnn_layers):
        w1, b1, w2, b2 = refs[idx], refs[idx + 1], refs[idx + 2], refs[idx + 3]
        idx += 4
        z = jnp.dot(a, h.astype(jnp.bfloat16),
                    preferred_element_type=jnp.float32)
        h1 = jnp.dot(z.astype(jnp.bfloat16), w1[...],
                     preferred_element_type=jnp.float32) + b1[...]
        h1 = jnp.maximum(h1, 0.0)
        h = jnp.dot(h1.astype(jnp.bfloat16), w2[...],
                    preferred_element_type=jnp.float32) + b2[...]
    mw1, mb1 = refs[idx], refs[idx + 1]
    mw2, mb2 = refs[idx + 2], refs[idx + 3]
    pooled = jnp.dot(p, h.astype(jnp.bfloat16),
                     preferred_element_type=jnp.float32)
    hm = jnp.dot(pooled.astype(jnp.bfloat16), mw1[...],
                 preferred_element_type=jnp.float32) + mb1[...]
    hm = jnp.maximum(hm, 0.0)
    logits = jnp.dot(hm.astype(jnp.bfloat16), mw2[...],
                     preferred_element_type=jnp.float32) + mb2[...]
    col = jax.lax.broadcasted_iota(jnp.int32, logits.shape, 1)
    logits = jnp.where(col < num_classes, logits, jnp.float32(-1e30))
    m = jnp.max(logits, axis=-1, keepdims=True)
    zc = logits - m
    lse = jnp.log(jnp.sum(jnp.exp(zc), axis=-1, keepdims=True))
    o_ref[...] = zc - lse


# ----------------------------- wrappers ------------------------------------ #

def gin_conv(a, x, params, tm=512, tk=1024):
    """a: [Np, Np] bf16 (self term folded), x: [Np, Fp] bf16."""
    w1, b1, w2, b2 = params
    n_pad = a.shape[0]
    in_pad = x.shape[1]
    h_pad = w2.shape[1]
    if n_pad >= 256:
        tm = min(tm, n_pad // 2)   # keep >= 2 row tiles so v7x megacore splits
    tm = _pick_tile(n_pad, tm)
    tk = _pick_tile(n_pad, tk)
    grid = (n_pad // tm, n_pad // tk)

    flops = (2 * n_pad * n_pad * in_pad
             + 2 * n_pad * in_pad * h_pad
             + 2 * n_pad * h_pad * h_pad)
    # A once + x once (resident) + weights + output
    bytes_accessed = 2 * (n_pad * n_pad + n_pad * in_pad + in_pad * h_pad
                          + h_pad * h_pad + n_pad * h_pad)

    return pl.pallas_call(
        functools.partial(gin_conv_kernel, tk),
        out_shape=jax.ShapeDtypeStruct((n_pad, h_pad), jnp.bfloat16),
        grid_spec=pltpu.PrefetchScalarGridSpec(
            num_scalar_prefetch=0,
            grid=grid,
            in_specs=[
                pl.BlockSpec((tm, tk), lambda i, k: (i, k)),          # A tile
                pl.BlockSpec((n_pad, in_pad), lambda i, k: (0, 0)),   # x resident
                pl.BlockSpec((in_pad, h_pad), lambda i, k: (0, 0)),   # w1
                pl.BlockSpec((1, h_pad), lambda i, k: (0, 0)),        # b1
                pl.BlockSpec((h_pad, h_pad), lambda i, k: (0, 0)),    # w2 (BN folded)
                pl.BlockSpec((1, h_pad), lambda i, k: (0, 0)),        # b2 (BN folded)
            ],
            out_specs=pl.BlockSpec((tm, h_pad), lambda i, k: (i, 0)),
            scratch_shapes=[pltpu.VMEM((tm, in_pad), jnp.float32)],
        ),
        compiler_params=pltpu.CompilerParams(
            dimension_semantics=("parallel", "arbitrary"),
            vmem_limit_bytes=32 * 1024 * 1024,
        ),
        cost_estimate=pl.CostEstimate(
            flops=flops, transcendentals=0, bytes_accessed=bytes_accessed),
    )(a, x, w1, b1, w2, b2)


def pool_mlp(p, x, params, num_classes, tk=2048):
    """p: [Gp, Np] bf16, x: [Np, Hp] bf16; returns padded [Gp, Cp] f32."""
    w1, b1, w2, b2 = params
    g_pad = p.shape[0]
    n_pad = p.shape[1]
    h_in = x.shape[1]
    h_mid = w1.shape[1]
    c_pad = w2.shape[1]
    tk = _pick_tile(n_pad, tk)
    grid = (n_pad // tk,)

    return pl.pallas_call(
        functools.partial(pool_mlp_kernel, int(num_classes)),
        out_shape=jax.ShapeDtypeStruct((g_pad, c_pad), jnp.float32),
        grid_spec=pltpu.PrefetchScalarGridSpec(
            num_scalar_prefetch=0,
            grid=grid,
            in_specs=[
                pl.BlockSpec((g_pad, tk), lambda k: (0, k)),     # P tile
                pl.BlockSpec((tk, h_in), lambda k: (k, 0)),      # x tile
                pl.BlockSpec((h_in, h_mid), lambda k: (0, 0)),   # w1
                pl.BlockSpec((1, h_mid), lambda k: (0, 0)),      # b1
                pl.BlockSpec((h_mid, c_pad), lambda k: (0, 0)),  # w2
                pl.BlockSpec((1, c_pad), lambda k: (0, 0)),      # b2
            ],
            out_specs=pl.BlockSpec((g_pad, c_pad), lambda k: (0, 0)),
            scratch_shapes=[pltpu.VMEM((g_pad, h_in), jnp.float32)],
        ),
        compiler_params=pltpu.CompilerParams(
            dimension_semantics=("arbitrary",),
            vmem_limit_bytes=32 * 1024 * 1024,
        ),
    )(p, x, w1, b1, w2, b2)


def fused_forward(a_p, x_p, p_p, conv_params_p, mlp_params_p, num_classes):
    g_pad = p_p.shape[0]
    c_pad = mlp_params_p[2].shape[1]
    flat = []
    for prm in conv_params_p:
        flat.extend(prm)
    flat.extend(mlp_params_p)
    return pl.pallas_call(
        functools.partial(fused_gin_kernel, int(num_classes),
                          len(conv_params_p)),
        out_shape=jax.ShapeDtypeStruct((g_pad, c_pad), jnp.float32),
        compiler_params=pltpu.CompilerParams(
            vmem_limit_bytes=48 * 1024 * 1024,
        ),
    )(a_p, x_p, p_p, *flat)


def gin_forward(x, a, p, conv_params, mlp_params, num_classes, eps=0.0,
                use_fused=None):
    """Pads to TPU-friendly shapes, folds self-loop/BN, dispatches kernels."""
    n, f = x.shape
    g = p.shape[0]
    n_pad = _round_up(n, 128)
    f_pad = _round_up(f, 128)
    g_pad = _round_up(g, 8)

    # Fold the (1 + eps) self term into the adjacency diagonal (exact in bf16
    # for eps = 0): z = (1+eps)*x + A@x == (A + (1+eps)I) @ x.
    a_self = a + (1.0 + eps) * jnp.eye(n, dtype=a.dtype)
    a_p = _pad2(a_self, n_pad, n_pad).astype(jnp.bfloat16)  # 0/1/2: exact in bf16
    p_p = _pad2(p, g_pad, n_pad).astype(jnp.bfloat16)       # 0/1: exact in bf16
    x_p = _pad2(x, n_pad, f_pad).astype(jnp.bfloat16)

    # Fold eval BatchNorm into the second Linear (exact, in f32 on host):
    #   (relu_out * s + b) @ w2 + b2 == relu_out @ (diag(s) @ w2) + (b @ w2 + b2)
    conv_params_p = []
    in_pad = f_pad
    h_pad = f_pad
    for (w1, b1, bns, bnb, w2, b2) in conv_params:
        h_pad = _round_up(w2.shape[1], 128)
        w2f = w2 * bns.reshape(-1, 1)
        b2f = bnb @ w2 + b2
        conv_params_p.append((
            _pad2(w1, in_pad, h_pad).astype(jnp.bfloat16),
            _pad2(b1, 1, h_pad),
            _pad2(w2f, h_pad, h_pad).astype(jnp.bfloat16),
            _pad2(b2f, 1, h_pad),
        ))
        in_pad = h_pad
        # TODO(synk): nn.Dropout is identity in eval mode; training-mode dropout
        # (random mask + 1/(1-p) scaling) is not implemented.

    mw1, mb1, mw2, mb2 = mlp_params
    h_mid = _round_up(mw1.shape[1], 128)
    c_pad = _round_up(mw2.shape[1], 128)
    mlp_params_p = (
        _pad2(mw1, h_pad, h_mid).astype(jnp.bfloat16),
        _pad2(mb1, 1, h_mid),
        _pad2(mw2, h_mid, c_pad).astype(jnp.bfloat16),
        _pad2(mb2, 1, c_pad),
    )

    if use_fused is None:
        resident_bytes = a_p.size * 2 + x_p.size * 2 + p_p.size * 2
        for prm in conv_params_p:
            resident_bytes += sum(int(t.size) * t.dtype.itemsize for t in prm)
        resident_bytes += sum(int(t.size) * t.dtype.itemsize
                              for t in mlp_params_p)
        resident_bytes += 3 * n_pad * max(f_pad, h_pad) * 4  # f32 temporaries
        # Conservative threshold so the resident plan also fits v7x's 64 MiB
        # VMEM per TensorCore (v5e/v6e have 128 MiB and fit easily).
        use_fused = (n_pad <= 2048) and (resident_bytes <= 32 * 1024 * 1024)

    if use_fused:
        out_p = fused_forward(a_p, x_p, p_p, conv_params_p, mlp_params_p,
                              num_classes)
    else:
        for prm in conv_params_p:
            x_p = gin_conv(a_p, x_p, prm)
        # TODO(synk): fuse global_add_pool into the last gin_conv epilogue
        # (per-row-tile partial pooled outputs + tiny reduce call) to avoid
        # re-streaming x [N, H] through HBM for the pooling pass.
        out_p = pool_mlp(p_p, x_p, mlp_params_p, num_classes)
    return out_p[:g, :num_classes]

# TODO(synk): for realistic sparse graphs, replace the dense [N, N] adjacency
# with an edge-list / CSR aggregation driven by PrefetchScalarGridSpec scalar
# prefetch (dense A costs O(N^2) HBM bytes regardless of edge count); a cheaper
# intermediate is a packed u32 bitmask expanded to bf16 in-kernel.


# ----------------------------- reference (pure JAX, f32) ------------------- #

def reference_forward(x, a, p, conv_params, mlp_params):
    h = x
    for (w1, b1, bns, bnb, w2, b2) in conv_params:
        z = h + a @ h                      # eps = 0
        h1 = jnp.maximum(z @ w1 + b1, 0.0)
        h1 = h1 * bns + bnb
        h = h1 @ w2 + b2
    mw1, mb1, mw2, mb2 = mlp_params
    pooled = p @ h
    hh = jnp.maximum(pooled @ mw1 + mb1, 0.0)
    logits = hh @ mw2 + mb2
    return jax.nn.log_softmax(logits, axis=1)


# ----------------------------- params -------------------------------------- #

def init_linear(key, fan_in, fan_out):
    kw, kb = jax.random.split(key)
    bound = 1.0 / jnp.sqrt(jnp.float32(fan_in))
    w = jax.random.uniform(kw, (fan_in, fan_out), jnp.float32, -bound, bound)
    b = jax.random.uniform(kb, (1, fan_out), jnp.float32, -bound, bound)
    return w, b


def init_bn_folded(key, dim, bn_eps=1e-5):
    kg, kb = jax.random.split(key)
    gamma = 1.0 + 0.1 * jax.random.normal(kg, (1, dim), jnp.float32)
    beta = 0.1 * jax.random.normal(kb, (1, dim), jnp.float32)
    running_mean = jnp.zeros((1, dim), jnp.float32)
    running_var = jnp.ones((1, dim), jnp.float32)
    scale = gamma / jnp.sqrt(running_var + bn_eps)
    shift = beta - running_mean * scale
    return scale, shift


def init_gin_params(key, gnn_layers, num_features, hidden_dim, num_classes):
    conv_params = []
    in_dim = num_features
    for _ in range(gnn_layers):
        key, k1, k2, k3 = jax.random.split(key, 4)
        w1, b1 = init_linear(k1, in_dim, hidden_dim)
        bns, bnb = init_bn_folded(k2, hidden_dim)
        w2, b2 = init_linear(k3, hidden_dim, hidden_dim)
        conv_params.append((w1, b1, bns, bnb, w2, b2))
        in_dim = hidden_dim
    key, k1, k2 = jax.random.split(key, 3)
    mw1, mb1 = init_linear(k1, hidden_dim, hidden_dim)
    mw2, mb2 = init_linear(k2, hidden_dim, num_classes)
    mlp_params = (mw1, mb1, mw2, mb2)
    return conv_params, mlp_params


# ----------------------------- main ---------------------------------------- #

if __name__ == "__main__":
    # model config (hidden_layers=2 in make_mlp -> [Linear,ReLU,BN] + [Linear])
    gnn_layers = 2
    num_features = 8
    hidden_dim = 32
    num_classes = 4

    # graph data: 2 graphs of 8 nodes each (undirected ring per graph)
    num_graphs = 2
    nodes_per_graph = 8
    num_nodes = num_graphs * nodes_per_graph

    key = jax.random.PRNGKey(0)
    key, kx, kp = jax.random.split(key, 3)
    x = jax.random.normal(kx, (num_nodes, num_features), jnp.float32)

    src_list, dst_list = [], []
    for g in range(num_graphs):
        off = g * nodes_per_graph
        for i in range(nodes_per_graph):
            a_node = off + i
            b_node = off + (i + 1) % nodes_per_graph
            src_list += [a_node, b_node]
            dst_list += [b_node, a_node]
    src = jnp.array(src_list, jnp.int32)
    dst = jnp.array(dst_list, jnp.int32)

    # dense adjacency: A[i, j] = 1 iff edge j -> i
    adj = jnp.zeros((num_nodes, num_nodes), jnp.float32).at[dst, src].set(1.0)

    # batch vector and pooling matrix P[g, n]
    batch = jnp.repeat(jnp.arange(num_graphs, dtype=jnp.int32), nodes_per_graph)
    pool = (batch[None, :] == jnp.arange(num_graphs, dtype=jnp.int32)[:, None])
    pool = pool.astype(jnp.float32)

    conv_params, mlp_params = init_gin_params(
        kp, gnn_layers, num_features, hidden_dim, num_classes)

    # auto dispatch (small graph -> fully-resident fused kernel)
    out = gin_forward(x, adj, pool, conv_params, mlp_params, num_classes)
    out = jax.block_until_ready(out)

    # also exercise the streamed / tiled path explicitly
    out_streamed = gin_forward(x, adj, pool, conv_params, mlp_params,
                               num_classes, use_fused=False)
    out_streamed = jax.block_until_ready(out_streamed)

    ref = reference_forward(x, adj, pool, conv_params, mlp_params)

    for o in (out, out_streamed):
        assert o.shape == (num_graphs, num_classes)
        assert bool(jnp.all(jnp.isfinite(o)))
        # rows of log_softmax must exp-sum to 1 (computed in f32)
        assert bool(jnp.allclose(jnp.exp(o).sum(axis=1), 1.0, atol=1e-5))
        # loose check vs f32 reference (kernels use bf16 MXU operands)
        assert bool(jnp.max(jnp.abs(o - ref)) < 0.5)
    # fused and streamed paths should agree closely (same bf16/f32 recipe)
    assert bool(jnp.max(jnp.abs(out - out_streamed)) < 0.05)

    print("KERNEL_OK")
</pallas_src>

<mosaic_0001>
module attributes {stable_mosaic.version = 11 : i64} {
  func.func @fused_gin_kernel(%arg0: memref<128x128xbf16, #tpu.memory_space<vmem>>, %arg1: memref<128x128xbf16, #tpu.memory_space<vmem>>, %arg2: memref<8x128xbf16, #tpu.memory_space<vmem>>, %arg3: memref<128x128xbf16, #tpu.memory_space<vmem>>, %arg4: memref<1x128xf32, #tpu.memory_space<vmem>>, %arg5: memref<128x128xbf16, #tpu.memory_space<vmem>>, %arg6: memref<1x128xf32, #tpu.memory_space<vmem>>, %arg7: memref<128x128xbf16, #tpu.memory_space<vmem>>, %arg8: memref<1x128xf32, #tpu.memory_space<vmem>>, %arg9: memref<128x128xbf16, #tpu.memory_space<vmem>>, %arg10: memref<1x128xf32, #tpu.memory_space<vmem>>, %arg11: memref<128x128xbf16, #tpu.memory_space<vmem>>, %arg12: memref<1x128xf32, #tpu.memory_space<vmem>>, %arg13: memref<128x128xbf16, #tpu.memory_space<vmem>>, %arg14: memref<1x128xf32, #tpu.memory_space<vmem>>, %arg15: memref<8x128xf32, #tpu.memory_space<vmem>>) attributes {dimension_semantics = [], scalar_prefetch = 0 : i64, scratch_operands = 0 : i64, tpu.core_type = #tpu.core_type<tc>} {
    %c0 = arith.constant 0 : index
    %c0_0 = arith.constant 0 : index
    %0 = vector.load %arg0[%c0, %c0_0] : memref<128x128xbf16, #tpu.memory_space<vmem>>, vector<128x128xbf16>
    %c0_1 = arith.constant 0 : index
    %c0_2 = arith.constant 0 : index
    %1 = vector.load %arg1[%c0_1, %c0_2] : memref<128x128xbf16, #tpu.memory_space<vmem>>, vector<128x128xbf16>
    %c0_3 = arith.constant 0 : index
    %c0_4 = arith.constant 0 : index
    %2 = vector.load %arg2[%c0_3, %c0_4] : memref<8x128xbf16, #tpu.memory_space<vmem>>, vector<8x128xbf16>
    %cst = arith.constant dense<0.000000e+00> : vector<128x128xf32>
    %3 = tpu.matmul %0, %1, %cst {dimension_numbers = #tpu.dot_dimension_numbers<[1], [0], [0], [1], [0, 0, 1, 1], [], []>} : vector<128x128xbf16>, vector<128x128xbf16>, vector<128x128xf32> -> vector<128x128xf32>
    %4 = arith.truncf %3 : vector<128x128xf32> to vector<128x128xbf16>
    %c0_5 = arith.constant 0 : index
    %c0_6 = arith.constant 0 : index
    %5 = vector.load %arg3[%c0_5, %c0_6] : memref<128x128xbf16, #tpu.memory_space<vmem>>, vector<128x128xbf16>
    %cst_7 = arith.constant dense<0.000000e+00> : vector<128x128xf32>
    %6 = tpu.matmul %4, %5, %cst_7 {dimension_numbers = #tpu.dot_dimension_numbers<[1], [0], [0], [1], [0, 0, 1, 1], [], []>} : vector<128x128xbf16>, vector<128x128xbf16>, vector<128x128xf32> -> vector<128x128xf32>
    %c0_8 = arith.constant 0 : index
    %c0_9 = arith.constant 0 : index
    %7 = vector.load %arg4[%c0_8, %c0_9] : memref<1x128xf32, #tpu.memory_space<vmem>>, vector<1x128xf32>
    %8 = vector.broadcast %7 : vector<1x128xf32> to vector<128x128xf32>
    %9 = arith.addf %6, %8 : vector<128x128xf32>
    %cst_10 = arith.constant 0.000000e+00 : f32
    %10 = vector.broadcast %cst_10 : f32 to vector<128x128xf32>
    %11 = arith.maximumf %9, %10 : vector<128x128xf32>
    %12 = arith.truncf %11 : vector<128x128xf32> to vector<128x128xbf16>
    %c0_11 = arith.constant 0 : index
    %c0_12 = arith.constant 0 : index
    %13 = vector.load %arg5[%c0_11, %c0_12] : memref<128x128xbf16, #tpu.memory_space<vmem>>, vector<128x128xbf16>
    %cst_13 = arith.constant dense<0.000000e+00> : vector<128x128xf32>
    %14 = tpu.matmul %12, %13, %cst_13 {dimension_numbers = #tpu.dot_dimension_numbers<[1], [0], [0], [1], [0, 0, 1, 1], [], []>} : vector<128x128xbf16>, vector<128x128xbf16>, vector<128x128xf32> -> vector<128x128xf32>
    %c0_14 = arith.constant 0 : index
    %c0_15 = arith.constant 0 : index
    %15 = vector.load %arg6[%c0_14, %c0_15] : memref<1x128xf32, #tpu.memory_space<vmem>>, vector<1x128xf32>
    %16 = vector.broadcast %15 : vector<1x128xf32> to vector<128x128xf32>
    %17 = arith.addf %14, %16 : vector<128x128xf32>
    %18 = arith.truncf %17 : vector<128x128xf32> to vector<128x128xbf16>
    %cst_16 = arith.constant dense<0.000000e+00> : vector<128x128xf32>
    %19 = tpu.matmul %0, %18, %cst_16 {dimension_numbers = #tpu.dot_dimension_numbers<[1], [0], [0], [1], [0, 0, 1, 1], [], []>} : vector<128x128xbf16>, vector<128x128xbf16>, vector<128x128xf32> -> vector<128x128xf32>
    %20 = arith.truncf %19 : vector<128x128xf32> to vector<128x128xbf16>
    %c0_17 = arith.constant 0 : index
    %c0_18 = arith.constant 0 : index
    %21 = vector.load %arg7[%c0_17, %c0_18] : memref<128x128xbf16, #tpu.memory_space<vmem>>, vector<128x128xbf16>
    %cst_19 = arith.constant dense<0.000000e+00> : vector<128x128xf32>
    %22 = tpu.matmul %20, %21, %cst_19 {dimension_numbers = #tpu.dot_dimension_numbers<[1], [0], [0], [1], [0, 0, 1, 1], [], []>} : vector<128x128xbf16>, vector<128x128xbf16>, vector<128x128xf32> -> vector<128x128xf32>
    %c0_20 = arith.constant 0 : index
    %c0_21 = arith.constant 0 : index
    %23 = vector.load %arg8[%c0_20, %c0_21] : memref<1x128xf32, #tpu.memory_space<vmem>>, vector<1x128xf32>
    %24 = vector.broadcast %23 : vector<1x128xf32> to vector<128x128xf32>
    %25 = arith.addf %22, %24 : vector<128x128xf32>
    %cst_22 = arith.constant 0.000000e+00 : f32
    %26 = vector.broadcast %cst_22 : f32 to vector<128x128xf32>
    %27 = arith.maximumf %25, %26 : vector<128x128xf32>
    %28 = arith.truncf %27 : vector<128x128xf32> to vector<128x128xbf16>
    %c0_23 = arith.constant 0 : index
    %c0_24 = arith.constant 0 : index
    %29 = vector.load %arg9[%c0_23, %c0_24] : memref<128x128xbf16, #tpu.memory_space<vmem>>, vector<128x128xbf16>
    %cst_25 = arith.constant dense<0.000000e+00> : vector<128x128xf32>
    %30 = tpu.matmul %28, %29, %cst_25 {dimension_numbers = #tpu.dot_dimension_numbers<[1], [0], [0], [1], [0, 0, 1, 1], [], []>} : vector<128x128xbf16>, vector<128x128xbf16>, vector<128x128xf32> -> vector<128x128xf32>
    %c0_26 = arith.constant 0 : index
    %c0_27 = arith.constant 0 : index
    %31 = vector.load %arg10[%c0_26, %c0_27] : memref<1x128xf32, #tpu.memory_space<vmem>>, vector<1x128xf32>
    %32 = vector.broadcast %31 : vector<1x128xf32> to vector<128x128xf32>
    %33 = arith.addf %30, %32 : vector<128x128xf32>
    %34 = arith.truncf %33 : vector<128x128xf32> to vector<128x128xbf16>
    %cst_28 = arith.constant dense<0.000000e+00> : vector<8x128xf32>
    %35 = tpu.matmul %2, %34, %cst_28 {dimension_numbers = #tpu.dot_dimension_numbers<[1], [0], [0], [1], [0, 0, 1, 1], [], []>} : vector<8x128xbf16>, vector<128x128xbf16>, vector<8x128xf32> -> vector<8x128xf32>
    %36 = arith.truncf %35 : vector<8x128xf32> to vector<8x128xbf16>
    %c0_29 = arith.constant 0 : index
    %c0_30 = arith.constant 0 : index
    %37 = vector.load %arg11[%c0_29, %c0_30] : memref<128x128xbf16, #tpu.memory_space<vmem>>, vector<128x128xbf16>
    %cst_31 = arith.constant dense<0.000000e+00> : vector<8x128xf32>
    %38 = tpu.matmul %36, %37, %cst_31 {dimension_numbers = #tpu.dot_dimension_numbers<[1], [0], [0], [1], [0, 0, 1, 1], [], []>} : vector<8x128xbf16>, vector<128x128xbf16>, vector<8x128xf32> -> vector<8x128xf32>
    %c0_32 = arith.constant 0 : index
    %c0_33 = arith.constant 0 : index
    %39 = vector.load %arg12[%c0_32, %c0_33] : memref<1x128xf32, #tpu.memory_space<vmem>>, vector<1x128xf32>
    %40 = vector.broadcast %39 : vector<1x128xf32> to vector<8x128xf32>
    %41 = arith.addf %38, %40 : vector<8x128xf32>
    %cst_34 = arith.constant 0.000000e+00 : f32
    %42 = vector.broadcast %cst_34 : f32 to vector<8x128xf32>
    %43 = arith.maximumf %41, %42 : vector<8x128xf32>
    %44 = arith.truncf %43 : vector<8x128xf32> to vector<8x128xbf16>
    %c0_35 = arith.constant 0 : index
    %c0_36 = arith.constant 0 : index
    %45 = vector.load %arg13[%c0_35, %c0_36] : memref<128x128xbf16, #tpu.memory_space<vmem>>, vector<128x128xbf16>
    %cst_37 = arith.constant dense<0.000000e+00> : vector<8x128xf32>
    %46 = tpu.matmul %44, %45, %cst_37 {dimension_numbers = #tpu.dot_dimension_numbers<[1], [0], [0], [1], [0, 0, 1, 1], [], []>} : vector<8x128xbf16>, vector<128x128xbf16>, vector<8x128xf32> -> vector<8x128xf32>
    %c0_38 = arith.constant 0 : index
    %c0_39 = arith.constant 0 : index
    %47 = vector.load %arg14[%c0_38, %c0_39] : memref<1x128xf32, #tpu.memory_space<vmem>>, vector<1x128xf32>
    %48 = vector.broadcast %47 : vector<1x128xf32> to vector<8x128xf32>
    %49 = arith.addf %46, %48 : vector<8x128xf32>
    %50 = tpu.iota {dimensions = array<i32: 1>} : vector<8x128xi32>
    %c4_i32 = arith.constant 4 : i32
    %51 = vector.broadcast %c4_i32 : i32 to vector<8x128xi32>
    %52 = arith.cmpi slt, %50, %51 : vector<8x128xi32>
    %cst_40 = arith.constant -1.000000e+30 : f32
    %53 = vector.broadcast %cst_40 : f32 to vector<8x128xf32>
    %54 = arith.select %52, %49, %53 : vector<8x128xi1>, vector<8x128xf32>
    %cst_41 = arith.constant dense<0xFF800000> : vector<8xf32>
    %55 = vector.multi_reduction <maximumf>, %54, %cst_41 [1] : vector<8x128xf32> to vector<8xf32>
    %56 = vector.shape_cast %55 : vector<8xf32> to vector<8x1xf32>
    %57 = vector.broadcast %56 : vector<8x1xf32> to vector<8x128xf32>
    %58 = arith.subf %54, %57 : vector<8x128xf32>
    %59 = math.exp %58 : vector<8x128xf32>
    %cst_42 = arith.constant dense<0.000000e+00> : vector<8xf32>
    %60 = vector.multi_reduction <add>, %59, %cst_42 [1] : vector<8x128xf32> to vector<8xf32>
    %61 = vector.shape_cast %60 : vector<8xf32> to vector<8x1xf32>
    %62 = math.log %61 : vector<8x1xf32>
    %63 = vector.broadcast %62 : vector<8x1xf32> to vector<8x128xf32>
    %64 = arith.subf %58, %63 : vector<8x128xf32>
    %c0_43 = arith.constant 0 : index
    %c0_44 = arith.constant 0 : index
    %65 = vector.load %arg15[%c0_43, %c0_44] : memref<8x128xf32, #tpu.memory_space<vmem>>, vector<8x128xf32>
    tpu.vector_store %arg15[%c0_43, %c0_44], %64 {strides = array<i32>} : memref<8x128xf32, #tpu.memory_space<vmem>>, vector<8x128xf32>,
    return
  }
}

</mosaic_0001>

<bundles_post_ra>
// kernel: tpu_custom_call.1
= control target key start
LH: loop header
LB: loop body
LE: loop exit
PB: predicated region body
PF: predicated region fallthrough
CT: control target
= control target key end

     0   :  { %20 = vsyncpa [#allocation3], 0  ;;  %s1984_s0 = inlined_call_operand.hbm [shape: bf16[128,128], index: 0, kind: input, shape index: {}]   ;;  %s1985_s1 = inlined_call_operand.hbm [shape: bf16[128,128], index: 1, kind: input, shape index: {}]   ;;  %s1986_s2 = inlined_call_operand.hbm [shape: bf16[8,128], index: 2, kind: input, shape index: {}]   ;;  %s1987_s3 = inlined_call_operand.hbm [shape: bf16[128,128], index: 3, kind: input, shape index: {}]   ;;  %s1988_s4 = inlined_call_operand.vmem [shape: f32[1,128], index: 4, kind: input, shape index: {}]   ;;  %s1989_s5 = inlined_call_operand.hbm [shape: bf16[128,128], index: 5, kind: input, shape index: {}]   ;;  %s1990_s6 = inlined_call_operand.vmem [shape: f32[1,128], index: 6, kind: input, shape index: {}]   ;;  %s1991_s7 = inlined_call_operand.hbm [shape: bf16[128,128], index: 7, kind: input, shape index: {}]   ;;  %s1992_s8 = inlined_call_operand.vmem [shape: f32[1,128], index: 8, kind: input, shape index: {}]   ;;  %s1993_s9 = inlined_call_operand.hbm [shape: bf16[128,128], index: 9, kind: input, shape index: {}]   ;;  %s1994_s10 = inlined_call_operand.vmem [shape: f32[1,128], index: 10, kind: input, shape index: {}]   ;;  %s1995_s11 = inlined_call_operand.hbm [shape: bf16[128,128], index: 11, kind: input, shape index: {}]   ;;  %s1996_s12 = inlined_call_operand.vmem [shape: f32[1,128], index: 12, kind: input, shape index: {}]   ;;  %s1997_s13 = inlined_call_operand.hbm [shape: bf16[128,128], index: 13, kind: input, shape index: {}]   ;;  %s1998_s14 = inlined_call_operand.vmem [shape: f32[1,128], index: 14, kind: input, shape index: {}]   ;;  %s1999_s15 = inlined_call_operand.hbm [shape: f32[8,128], index: 15, kind: output, shape index: {}]  }
   0x1   :  { %21 = vsyncpa [#allocation6], 0 }
   0x2   :  { %22 = vsyncpa [#allocation9], 0 }
   0x3   :  { %23 = vsyncpa [#allocation12], 0 }
   0x4   :  { %24 = vsyncpa [#allocation15], 0 }
   0x5   :  { %25 = vsyncpa [#allocation4], 0  ;;  %s43_s20 = sshll.u32 %s1985_s1, 4  ;;  %s1788_s21 = smov [#allocation5]   ;;  %s44_s20 = int_to_ptr.hbm [resolvable:$true] %s43_s20 }
   0x6   :  { %s45_s22 = sshll.u32 %s1788_s21, 4  ;;  %s67_s25 = sshll.u32 %s1987_s3, 4  ;;  %s46_s22 = int_to_ptr.vmem [resolvable:$true] %s45_s22  ;;  %s68_s25 = int_to_ptr.hbm [resolvable:$true] %s67_s25 }
   0x7   :  { %s1789_s26 = smov 64   ;;  %s1790_s27 = smov 4  }
   0x8   :  { %51 = dma.hbm_to_vmem [thread:$0]  %s44_s20, 1024, %s46_s22, [#allocation6], %s1789_s26, %s1789_s26, %s1790_s27  }
   0x9   :  { %s1791_s28 = smov [#allocation8]   ;;  %s97_s1 = sshll.u32 %s1991_s7, 4  ;;  %s98_s1 = int_to_ptr.hbm [resolvable:$true] %s97_s1 }
   0xa   :  { %s69_s29 = sshll.u32 %s1791_s28, 4  ;;  %s127_s18 = sshll.u32 %s1995_s11, 4  ;;  %s70_s29 = int_to_ptr.vmem [resolvable:$true] %s69_s29  ;;  %s128_s18 = int_to_ptr.hbm [resolvable:$true] %s127_s18 }
   0xb   :  { %75 = dma.hbm_to_vmem [thread:$0]  %s68_s25, 1024, %s70_s29, [#allocation9], %s1789_s26, %s1789_s26, %s1790_s27  }
   0xc   :  { %s1792_s19 = smov [#allocation11]   ;;  %s1793_s20 = smov [#allocation14]  }
   0xd   :  { %s99_s21 = sshll.u32 %s1792_s19, 4  ;;  %s129_s7 = sshll.u32 %s1793_s20, 4  ;;  %s100_s21 = int_to_ptr.vmem [resolvable:$true] %s99_s21  ;;  %s130_s7 = int_to_ptr.vmem [resolvable:$true] %s129_s7 }
   0xe   :  { %105 = dma.hbm_to_vmem [thread:$0]  %s98_s1, 1024, %s100_s21, [#allocation12], %s1789_s26, %s1789_s26, %s1790_s27  }
   0xf   :  { %s30_s24 = sshll.u32 %s1984_s0, 4  ;;  %s57_s28 = sshll.u32 %s1986_s2, 4  ;;  %s31_s24 = int_to_ptr.hbm [resolvable:$true] %s30_s24  ;;  %s58_s28 = int_to_ptr.hbm [resolvable:$true] %s57_s28 }
  0x10   :  { %135 = dma.hbm_to_vmem [thread:$0]  %s128_s18, 1024, %s130_s7, [#allocation15], %s1789_s26, %s1789_s26, %s1790_s27  }
  0x11   :  { %s1794_s29 = smov [#allocation2]   ;;  %s1795_s16 = smov [#allocation7]  }
  0x12   :  { %s32_s30 = sshll.u32 %s1794_s29, 4  ;;  %s59_s0 = sshll.u32 %s1795_s16, 4  ;;  %s33_s30 = int_to_ptr.vmem [resolvable:$true] %s32_s30  ;;  %s60_s0 = int_to_ptr.vmem [resolvable:$true] %s59_s0 }
  0x13   :  { %38 = dma.hbm_to_vmem [thread:$0]  %s31_s24, 1024, %s33_s30, [#allocation3], %s1789_s26, %s1789_s26, %s1790_s27  }
  0x14   :  { %s82_s17 = sshll.u32 %s1989_s5, 4  ;;  %s112_s2 = sshll.u32 %s1993_s9, 4  ;;  %s83_s17 = int_to_ptr.hbm [resolvable:$true] %s82_s17  ;;  %s113_s2 = int_to_ptr.hbm [resolvable:$true] %s112_s2 }
  0x15   :  { %62 = dma.hbm_to_vmem [thread:$0]  %s58_s28, 64, %s60_s0, [#allocation6]  }
  0x16   :  { %s1796_s21 = smov [#allocation10]   ;;  %s1797_s7 = smov [#allocation13]  }
  0x17   :  { %s84_s20 = sshll.u32 %s1796_s21, 4  ;;  %s114_s22 = sshll.u32 %s1797_s7, 4  ;;  %s85_s20 = int_to_ptr.vmem [resolvable:$true] %s84_s20  ;;  %s115_s22 = int_to_ptr.vmem [resolvable:$true] %s114_s22 }
  0x18   :  { %90 = dma.hbm_to_vmem [thread:$0]  %s83_s17, 1024, %s85_s20, [#allocation9], %s1789_s26, %s1789_s26, %s1790_s27  }
  0x19   :  { %s142_s5 = sshll.u32 %s1997_s13, 4  ;;  %s1798_s9 = smov [#allocation16]   ;;  %s143_s5 = int_to_ptr.hbm [resolvable:$true] %s142_s5 }
  0x1a   :  { %120 = dma.hbm_to_vmem [thread:$0]  %s113_s2, 1024, %s115_s22, [#allocation12], %s1789_s26, %s1789_s26, %s1790_s27  }
  0x1b   :  { %s144_s11 = sshll.u32 %s1798_s9, 4  ;;  %s145_s11 = int_to_ptr.vmem [resolvable:$true] %s144_s11 }
  0x1c   :  { %150 = dma.hbm_to_vmem [thread:$0]  %s143_s5, 1024, %s145_s11, [#allocation15], %s1789_s26, %s1789_s26, %s1790_s27  }
  0x1d   :  { %1776 = dma.done.wait [#allocation3], 1024  }
  0x1e   :  { %1777 = vsyncadd [#allocation3], 4294966272 }
  0x1f   :  { %1778 = dma.done.wait [#allocation6], 1088  }
  0x20   :  { %1779 = vsyncadd [#allocation6], 4294966208 }
  0x21   :  { %1780 = dma.done.wait [#allocation9], 2048  }
  0x22   :  { %1781 = vsyncadd [#allocation9], 4294965248 }
  0x23   :  { %1782 = dma.done.wait [#allocation12], 2048  }
  0x24   :  { %1783 = vsyncadd [#allocation12], 4294965248 }
  0x25   :  { %1784 = dma.done.wait [#allocation15], 2048  }
  0x26   :  { %1785 = vsyncadd [#allocation15], 4294965248  ;;  %v1449_v0 = vld [vmem:[#allocation5 + $0x38] sm:$0xff]  ;;  %v1448_v1 = vld [vmem:[#allocation5 + $0x30] sm:$0xff] }
  0x27   :  { %318 = vmatpush.bf16.msra.mxu0 %v1449_v0  ;;  %1498 = vmatpush.bf16.msra.mxu3 %v1449_v0  ;;  %v1447_v2 = vld [vmem:[#allocation5 + $0x28] sm:$0xff]  ;;  %v1446_v3 = vld [vmem:[#allocation5 + $0x20] sm:$0xff]  ;;  %v1445_v4 = vld [vmem:[#allocation5 + $0x18] sm:$0xff] }
  0x28   :  { %v1444_v5 = vld [vmem:[#allocation5 + $0x10] sm:$0xff]  ;;  %v1443_v6 = vld [vmem:[#allocation5 + $0x8] sm:$0xff]  ;;  %v1442_v7 = vld [vmem:[#allocation5] sm:$0xff] }
  0x29   :  { %v1931_v8 = vld [vmem:[#allocation2] sm:$0xff]  ;;  %v1934_v9 = vld [vmem:[#allocation2 + $0x8] sm:$0xff]  ;;  %v1940_v11 = vld [vmem:[#allocation2 + $0x10] sm:$0xff] }
  0x2a   :  { %v1937_v10 = vld [vmem:[#allocation2 + $0x28] sm:$0xff]  ;;  %v1943_v12 = vld [vmem:[#allocation2 + $0x30] sm:$0xff]  ;;  %v1457_v13 = vld [vmem:[#allocation8 + $0x38] sm:$0xff] }
  0x2b   :  { %319 = vmatpush.bf16.msra.mxu0 %v1448_v1  ;;  %1499 = vmatpush.bf16.msra.mxu3 %v1448_v1  ;;  %v1456_v14 = vld [vmem:[#allocation8 + $0x30] sm:$0xff]  ;;  %v1455_v15 = vld [vmem:[#allocation8 + $0x28] sm:$0xff]  ;;  %v1454_v16 = vld [vmem:[#allocation8 + $0x20] sm:$0xff] }
  0x2c   :  { %443 = vmatpush.bf16.msra.mxu1 %v1457_v13  ;;  %1506 = vmatpush.bf16.msra.mxu2 %v1457_v13  ;;  %v1946_v17 = vld [vmem:[#allocation2 + $0x18] sm:$0xff]  ;;  %v1952_v20 = vld [vmem:[#allocation2 + $0x20] sm:$0xff]  ;;  %v1451_v22 = vld [vmem:[#allocation8 + $0x8] sm:$0xff] }
  0x2d   :  { %v1948_v18 = vld [vmem:[#allocation2 + $0x38] sm:$0xff]  ;;  %v1450_v23 = vld [vmem:[#allocation8] sm:$0xff]  ;;  %v1463_v41 = vld [vmem:[#allocation10 + $0x28] sm:$0xff] }
  0x2e   :  { %v1453_v19 = vld [vmem:[#allocation8 + $0x18] sm:$0xff]  ;;  %v1452_v21 = vld [vmem:[#allocation8 + $0x10] sm:$0xff]  ;;  %v1462_v43 = vld [vmem:[#allocation10 + $0x20] sm:$0xff] }
  0x2f   :  { %320 = vmatpush.bf16.msra.mxu0 %v1447_v2  ;;  %1500 = vmatpush.bf16.msra.mxu3 %v1447_v2  ;;  %v1465_v37 = vld [vmem:[#allocation10 + $0x38] sm:$0xff]  ;;  %v1464_v38 = vld [vmem:[#allocation10 + $0x30] sm:$0xff]  ;;  %v1459_v54 = vld [vmem:[#allocation10 + $0x8] sm:$0xff] }
  0x30   :  { %444 = vmatpush.bf16.msra.mxu1 %v1456_v14  ;;  %1507 = vmatpush.bf16.msra.mxu2 %v1456_v14  ;;  %v1461_v52 = vld [vmem:[#allocation10 + $0x18] sm:$0xff]  ;;  %v1460_v53 = vld [vmem:[#allocation10 + $0x10] sm:$0xff]  ;;  %v1458_v55 = vld [vmem:[#allocation10] sm:$0xff] }
  0x31   :  { %v1526_v57 = vld [vmem:[%s1988_s4] ss:$0 sm:$0xff] }
  0x33   :  { %321 = vmatpush.bf16.msra.mxu0 %v1446_v3  ;;  %1501 = vmatpush.bf16.msra.mxu3 %v1446_v3 }
  0x34   :  { %445 = vmatpush.bf16.msra.mxu1 %v1455_v15  ;;  %1508 = vmatpush.bf16.msra.mxu2 %v1455_v15 }
  0x37   :  { %322 = vmatpush.bf16.msra.mxu0 %v1445_v4  ;;  %1502 = vmatpush.bf16.msra.mxu3 %v1445_v4 }
  0x38   :  { %446 = vmatpush.bf16.msra.mxu1 %v1454_v16  ;;  %1509 = vmatpush.bf16.msra.mxu2 %v1454_v16 }
  0x3b   :  { %323 = vmatpush.bf16.msra.mxu0 %v1444_v5  ;;  %1503 = vmatpush.bf16.msra.mxu3 %v1444_v5 }
  0x3c   :  { %447 = vmatpush.bf16.msra.mxu1 %v1453_v19  ;;  %1510 = vmatpush.bf16.msra.mxu2 %v1453_v19 }
  0x3f   :  { %324 = vmatpush.bf16.msra.mxu0 %v1443_v6  ;;  %1504 = vmatpush.bf16.msra.mxu3 %v1443_v6 }
  0x40   :  { %448 = vmatpush.bf16.msra.mxu1 %v1452_v21  ;;  %1511 = vmatpush.bf16.msra.mxu2 %v1452_v21 }
  0x43   :  { %325 = vmatpush.bf16.msra.mxu0 %v1442_v7  ;;  %1505 = vmatpush.bf16.msra.mxu3 %v1442_v7 }
  0x44   :  { %449 = vmatpush.bf16.msra.mxu1 %v1451_v22  ;;  %1512 = vmatpush.bf16.msra.mxu2 %v1451_v22 }
  0x46   :  { %326 = vmatmul.bf16.vlgmr.msra.gmra.mxu0 %v1931_v8  ;;  %351 = vmatmul.bf16.vlgmr.msra.gmra.mxu3 %v1937_v10 }
  0x48   :  { %450 = vmatpush.bf16.msra.mxu1 %v1450_v23  ;;  %1513 = vmatpush.bf16.msra.mxu2 %v1450_v23 }
  0x4c   :  { %584 = vmatpush.bf16.msrb.mxu2 %v1465_v37 }
  0x50   :  { %585 = vmatpush.bf16.msrb.mxu2 %v1464_v38 }
  0x54   :  { %586 = vmatpush.bf16.msrb.mxu2 %v1463_v41 }
  0x56   :  { %331 = vmatmul.bf16.gmra.mxu0 %v1934_v9  ;;  %356 = vmatmul.bf16.gmra.mxu3 %v1943_v12 }
  0x58   :  { %587 = vmatpush.bf16.msrb.mxu2 %v1462_v43 }
  0x5c   :  { %588 = vmatpush.bf16.msrb.mxu2 %v1461_v52 }
  0x60   :  { %589 = vmatpush.bf16.msrb.mxu2 %v1460_v53 }
  0x64   :  { %590 = vmatpush.bf16.msrb.mxu2 %v1459_v54 }
  0x66   :  { %336 = vmatmul.bf16.gmra.mxu0 %v1940_v11  ;;  %361 = vmatmul.bf16.gmra.mxu3 %v1948_v18 }
  0x68   :  { %591 = vmatpush.bf16.msrb.mxu2 %v1458_v55 }
  0x76   :  { %341 = vmatmul.bf16.gmra.mxu0 %v1946_v17 }
  0x86   :  { %346 = vmatmul.bf16.gmra.mxu0 %v1952_v20 }
  0xc3   :  { %v327_v24 = vpop.f32.mrf.mxu0 }
  0xc9   :  { %v352_v30 = vpop.f32.mrf.mxu3 }
  0xcb   :  { %v329_v25 = vpop.f32.mrf.mxu0 }
  0xcc   :  { %v367_v26 = vpack.c.bf16 %v329_v25, %v327_v24 }
  0xce   :  { %451 = vmatmul.bf16.vlgmr.msra.gmra.mxu1 %v367_v26 }
  0xd1   :  { %v354_v32 = vpop.f32.mrf.mxu3 }
  0xd2   :  { %v372_v33 = vpack.c.bf16 %v354_v32, %v352_v30 }
  0xd3   :  { %v332_v27 = vpop.f32.mrf.mxu0 }
  0xd4   :  { %476 = vmatmul.bf16.vlgmr.msra.gmra.mxu2 %v372_v33 }
  0xd9   :  { %v357_v36 = vpop.f32.mrf.mxu3 }
  0xdb   :  { %v334_v28 = vpop.f32.mrf.mxu0 }
  0xdc   :  { %v368_v29 = vpack.c.bf16 %v334_v28, %v332_v27 }
  0xde   :  { %456 = vmatmul.bf16.gmra.mxu1 %v368_v29 }
  0xe1   :  { %v359_v40 = vpop.f32.mrf.mxu3 }
  0xe2   :  { %v373_v42 = vpack.c.bf16 %v359_v40, %v357_v36 }
  0xe3   :  { %v337_v31 = vpop.f32.mrf.mxu0 }
  0xe4   :  { %481 = vmatmul.bf16.gmra.mxu2 %v373_v42 }
  0xe9   :  { %v362_v46 = vpop.f32.mrf.mxu3 }
  0xeb   :  { %v339_v34 = vpop.f32.mrf.mxu0 }
  0xec   :  { %v369_v35 = vpack.c.bf16 %v339_v34, %v337_v31 }
  0xee   :  { %461 = vmatmul.bf16.gmra.mxu1 %v369_v35 }
  0xf1   :  { %v364_v48 = vpop.f32.mrf.mxu3 }
  0xf2   :  { %v374_v49 = vpack.c.bf16 %v364_v48, %v362_v46 }
  0xf3   :  { %v342_v39 = vpop.f32.mrf.mxu0 }
  0xf4   :  { %486 = vmatmul.bf16.gmra.mxu2 %v374_v49 }
  0xfb   :  { %v344_v44 = vpop.f32.mrf.mxu0 }
  0xfc   :  { %v370_v45 = vpack.c.bf16 %v344_v44, %v342_v39 }
  0xfe   :  { %466 = vmatmul.bf16.gmra.mxu1 %v370_v45 }
 0x103   :  { %v347_v47 = vpop.f32.mrf.mxu0 }
 0x10b   :  { %v349_v50 = vpop.f32.mrf.mxu0 }
 0x10c   :  { %v371_v51 = vpack.c.bf16 %v349_v50, %v347_v47 }
 0x10e   :  { %471 = vmatmul.bf16.gmra.mxu1 %v371_v51 }
 0x14b   :  { %v452_v56 = vpop.f32.mrf.mxu1 }
 0x14c   :  { %v453_v58 = vadd.f32 %v1526_v57, %v452_v56 }
 0x14e   :  { %v492_v61 = vmax.f32 %v453_v58, 0.0 }
 0x153   :  { %v454_v59 = vpop.f32.mrf.mxu1 }
 0x154   :  { %v455_v60 = vadd.f32 %v1526_v57, %v454_v59  ;;  %v1527_v59 = vld [vmem:[%s1990_s6] ss:$0 sm:$0xff] }
 0x156   :  { %v493_v62 = vmax.f32 %v455_v60, 0.0 }
 0x157   :  { %v477_v30 = vpop.f32.mrf.mxu2 }
 0x158   :  { %v508_v63 = vpack.c.bf16 %v493_v62, %v492_v61  ;;  %v478_v39 = vadd.f32 %v1526_v57, %v477_v30 }
 0x15a   :  { %592 = vmatmul.bf16.vlgmr.msrb.gmra.mxu2 %v508_v63  ;;  %v502_v41 = vmax.f32 %v478_v39, 0.0 }
 0x15b   :  { %v457_v0 = vpop.f32.mrf.mxu1 }
 0x15c   :  { %v458_v1 = vadd.f32 %v1526_v57, %v457_v0 }
 0x15e   :  { %v494_v4 = vmax.f32 %v458_v1, 0.0 }
 0x15f   :  { %v479_v34 = vpop.f32.mrf.mxu2 }
 0x160   :  { %v480_v40 = vadd.f32 %v1526_v57, %v479_v34 }
 0x162   :  { %v503_v42 = vmax.f32 %v480_v40, 0.0 }
 0x163   :  { %v459_v2 = vpop.f32.mrf.mxu1 }
 0x164   :  { %v460_v3 = vadd.f32 %v1526_v57, %v459_v2  ;;  %v513_v43 = vpack.c.bf16 %v503_v42, %v502_v41  ;;  %v1473_v42 = vld [vmem:[#allocation11 + $0x38] sm:$0xff] }
 0x165   :  { %766 = vmatpush.bf16.msrb.mxu0 %v1473_v42 }
 0x166   :  { %v495_v5 = vmax.f32 %v460_v3, 0.0 }
 0x167   :  { %v482_v38 = vpop.f32.mrf.mxu2 }
 0x168   :  { %v509_v6 = vpack.c.bf16 %v495_v5, %v494_v4  ;;  %v483_v45 = vadd.f32 %v1526_v57, %v482_v38 }
 0x16a   :  { %597 = vmatmul.bf16.gmra.mxu2 %v509_v6  ;;  %v504_v48 = vmax.f32 %v483_v45, 0.0  ;;  %v1470_v45 = vld [vmem:[#allocation11 + $0x20] sm:$0xff] }
 0x16b   :  { %v462_v7 = vpop.f32.mrf.mxu1 }
 0x16c   :  { %v463_v13 = vadd.f32 %v1526_v57, %v462_v7 }
 0x16e   :  { %v496_v16 = vmax.f32 %v463_v13, 0.0 }
 0x16f   :  { %v484_v44 = vpop.f32.mrf.mxu2 }
 0x170   :  { %v485_v46 = vadd.f32 %v1526_v57, %v484_v44  ;;  %v1471_v44 = vld [vmem:[#allocation11 + $0x28] sm:$0xff] }
 0x172   :  { %v505_v49 = vmax.f32 %v485_v46, 0.0  ;;  %v1469_v46 = vld [vmem:[#allocation11 + $0x18] sm:$0xff] }
 0x173   :  { %v464_v14 = vpop.f32.mrf.mxu1 }
 0x174   :  { %v465_v15 = vadd.f32 %v1526_v57, %v464_v14  ;;  %v514_v50 = vpack.c.bf16 %v505_v49, %v504_v48 }
 0x176   :  { %v497_v19 = vmax.f32 %v465_v15, 0.0 }
 0x177   :  { %v487_v47 = vpop.f32.mrf.mxu2 }
 0x178   :  { %v510_v21 = vpack.c.bf16 %v497_v19, %v496_v16  ;;  %v488_v52 = vadd.f32 %v1526_v57, %v487_v47 }
 0x17a   :  { %602 = vmatmul.bf16.gmra.mxu2 %v510_v21  ;;  %v506_v54 = vmax.f32 %v488_v52, 0.0 }
 0x17b   :  { %v467_v22 = vpop.f32.mrf.mxu1 }
 0x17c   :  { %v468_v23 = vadd.f32 %v1526_v57, %v467_v22 }
 0x17e   :  { %v498_v26 = vmax.f32 %v468_v23, 0.0 }
 0x17f   :  { %v489_v51 = vpop.f32.mrf.mxu2 }
 0x180   :  { %v490_v53 = vadd.f32 %v1526_v57, %v489_v51 }
 0x182   :  { %v507_v55 = vmax.f32 %v490_v53, 0.0 }
 0x183   :  { %v469_v24 = vpop.f32.mrf.mxu1 }
 0x184   :  { %v470_v25 = vadd.f32 %v1526_v57, %v469_v24  ;;  %v515_v56 = vpack.c.bf16 %v507_v55, %v506_v54 }
 0x186   :  { %v499_v27 = vmax.f32 %v470_v25, 0.0 }
 0x188   :  { %v511_v28 = vpack.c.bf16 %v499_v27, %v498_v26 }
 0x18a   :  { %607 = vmatmul.bf16.gmra.mxu2 %v511_v28 }
 0x18b   :  { %v472_v29 = vpop.f32.mrf.mxu1 }
 0x18c   :  { %v473_v31 = vadd.f32 %v1526_v57, %v472_v29 }
 0x18e   :  { %v500_v35 = vmax.f32 %v473_v31, 0.0 }
 0x193   :  { %v474_v32 = vpop.f32.mrf.mxu1 }
 0x194   :  { %v475_v33 = vadd.f32 %v1526_v57, %v474_v32 }
 0x196   :  { %v501_v36 = vmax.f32 %v475_v33, 0.0 }
 0x198   :  { %v512_v37 = vpack.c.bf16 %v501_v36, %v500_v35 }
 0x19a   :  { %612 = vmatmul.bf16.gmra.mxu2 %v512_v37 }
 0x1aa   :  { %617 = vmatmul.bf16.gmra.mxu2 %v513_v43  ;;  %v1472_v43 = vld [vmem:[#allocation11 + $0x30] sm:$0xff] }
 0x1ab   :  { %767 = vmatpush.bf16.msrb.mxu0 %v1472_v43 }
 0x1af   :  { %768 = vmatpush.bf16.msrb.mxu0 %v1471_v44 }
 0x1b3   :  { %769 = vmatpush.bf16.msrb.mxu0 %v1470_v45 }
 0x1b7   :  { %770 = vmatpush.bf16.msrb.mxu0 %v1469_v46 }
 0x1ba   :  { %622 = vmatmul.bf16.gmra.mxu2 %v514_v50 }
 0x1ca   :  { %627 = vmatmul.bf16.gmra.mxu2 %v515_v56 }
 0x1dd   :  { %v593_v58 = vpop.f32.mrf.mxu2 }
 0x1de   :  { %v594_v61 = vadd.f32 %v1527_v59, %v593_v58 }
 0x1e5   :  { %v595_v60 = vpop.f32.mrf.mxu2 }
 0x1e6   :  { %v596_v62 = vadd.f32 %v1527_v59, %v595_v60 }
 0x1e8   :  { %v633_v63 = vpack.c.bf16 %v596_v62, %v594_v61  ;;  %v1480_v62 = vld [vmem:[#allocation13 + $0x30] sm:$0xff] }
 0x1ed   :  { %v598_v0 = vpop.f32.mrf.mxu2 }
 0x1ee   :  { %v599_v2 = vadd.f32 %v1527_v59, %v598_v0 }
 0x1f5   :  { %v600_v1 = vpop.f32.mrf.mxu2 }
 0x1f6   :  { %v601_v3 = vadd.f32 %v1527_v59, %v600_v1  ;;  %v1478_v1 = vld [vmem:[#allocation13 + $0x20] sm:$0xff] }
 0x1f8   :  { %v634_v4 = vpack.c.bf16 %v601_v3, %v599_v2  ;;  %v1477_v2 = vld [vmem:[#allocation13 + $0x18] sm:$0xff] }
 0x1fd   :  { %v603_v5 = vpop.f32.mrf.mxu2 }
 0x1fe   :  { %v604_v6 = vadd.f32 %v1527_v59, %v603_v5  ;;  %v1476_v5 = vld [vmem:[#allocation13 + $0x10] sm:$0xff] }
 0x205   :  { %v605_v57 = vpop.f32.mrf.mxu2 }
 0x206   :  { %v606_v7 = vadd.f32 %v1527_v59, %v605_v57  ;;  %v1475_v57 = vld [vmem:[#allocation13 + $0x8] sm:$0xff] }
 0x208   :  { %v635_v13 = vpack.c.bf16 %v606_v7, %v604_v6  ;;  %v1474_v7 = vld [vmem:[#allocation13] sm:$0xff] }
 0x20d   :  { %v608_v14 = vpop.f32.mrf.mxu2 }
 0x20e   :  { %v609_v16 = vadd.f32 %v1527_v59, %v608_v14 }
 0x215   :  { %v610_v15 = vpop.f32.mrf.mxu2 }
 0x216   :  { %v611_v19 = vadd.f32 %v1527_v59, %v610_v15 }
 0x218   :  { %v636_v21 = vpack.c.bf16 %v611_v19, %v609_v16  ;;  %v1528_v16 = vld [vmem:[%s1992_s8] ss:$0 sm:$0xff] }
 0x21d   :  { %v613_v22 = vpop.f32.mrf.mxu2 }
 0x21e   :  { %v614_v40 = vadd.f32 %v1527_v59, %v613_v22 }
 0x225   :  { %v615_v23 = vpop.f32.mrf.mxu2 }
 0x226   :  { %v616_v38 = vadd.f32 %v1527_v59, %v615_v23 }
 0x228   :  { %v637_v41 = vpack.c.bf16 %v616_v38, %v614_v40 }
 0x22d   :  { %v618_v24 = vpop.f32.mrf.mxu2 }
 0x22e   :  { %v619_v37 = vadd.f32 %v1527_v59, %v618_v24 }
 0x235   :  { %v620_v25 = vpop.f32.mrf.mxu2 }
 0x236   :  { %v621_v35 = vadd.f32 %v1527_v59, %v620_v25 }
 0x238   :  { %v638_v39 = vpack.c.bf16 %v621_v35, %v619_v37 }
 0x23d   :  { %v623_v26 = vpop.f32.mrf.mxu2 }
 0x23e   :  { %v624_v34 = vadd.f32 %v1527_v59, %v623_v26 }
 0x245   :  { %v625_v27 = vpop.f32.mrf.mxu2 }
 0x246   :  { %v626_v32 = vadd.f32 %v1527_v59, %v625_v27 }
 0x248   :  { %v639_v36 = vpack.c.bf16 %v626_v32, %v624_v34 }
 0x24d   :  { %v628_v28 = vpop.f32.mrf.mxu2 }
 0x24e   :  { %v629_v30 = vadd.f32 %v1527_v59, %v628_v28 }
 0x255   :  { %v630_v29 = vpop.f32.mrf.mxu2 }
 0x256   :  { %v631_v31 = vadd.f32 %v1527_v59, %v630_v29  ;;  %v1481_v59 = vld [vmem:[#allocation13 + $0x38] sm:$0xff] }
 0x257   :  { %907 = vmatpush.bf16.msrb.mxu1 %v1481_v59 }
 0x258   :  { %v640_v33 = vpack.c.bf16 %v631_v31, %v629_v30 }
 0x25a   :  { %641 = vmatpush.bf16.msrb.mxu3 %v640_v33 }
 0x25b   :  { %908 = vmatpush.bf16.msrb.mxu1 %v1480_v62 }
 0x25e   :  { %642 = vmatpush.bf16.msrb.mxu3 %v639_v36 }
 0x262   :  { %643 = vmatpush.bf16.msrb.mxu3 %v638_v39 }
 0x266   :  { %644 = vmatpush.bf16.msrb.mxu3 %v637_v41 }
 0x26a   :  { %645 = vmatpush.bf16.msrb.mxu3 %v636_v21 }
 0x26e   :  { %646 = vmatpush.bf16.msrb.mxu3 %v635_v13 }
 0x272   :  { %647 = vmatpush.bf16.msrb.mxu3 %v634_v4 }
 0x276   :  { %648 = vmatpush.bf16.msrb.mxu3 %v633_v63  ;;  %v1479_v63 = vld [vmem:[#allocation13 + $0x28] sm:$0xff] }
 0x277   :  { %909 = vmatpush.bf16.msrb.mxu1 %v1479_v63 }
 0x279   :  { %649 = vmatmul.bf16.vlgmr.msrb.gmra.mxu3 %v1931_v8  ;;  %v1468_v8 = vld [vmem:[#allocation11 + $0x10] sm:$0xff] }
 0x27a   :  { %771 = vmatpush.bf16.msrb.mxu0 %v1468_v8 }
 0x27b   :  { %910 = vmatpush.bf16.msrb.mxu1 %v1478_v1 }
 0x27f   :  { %911 = vmatpush.bf16.msrb.mxu1 %v1477_v2 }
 0x283   :  { %912 = vmatpush.bf16.msrb.mxu1 %v1476_v5  ;;  %v1529_v5 = vld [vmem:[%s1994_s10] ss:$0 sm:$0xff] }
 0x287   :  { %913 = vmatpush.bf16.msrb.mxu1 %v1475_v57 }
 0x289   :  { %654 = vmatmul.bf16.gmra.mxu3 %v1934_v9  ;;  %v1467_v9 = vld [vmem:[#allocation11 + $0x8] sm:$0xff] }
 0x28a   :  { %772 = vmatpush.bf16.msrb.mxu0 %v1467_v9 }
 0x28b   :  { %914 = vmatpush.bf16.msrb.mxu1 %v1474_v7 }
 0x299   :  { %659 = vmatmul.bf16.gmra.mxu3 %v1940_v11  ;;  %v1466_v11 = vld [vmem:[#allocation11] sm:$0xff] }
 0x29a   :  { %773 = vmatpush.bf16.msrb.mxu0 %v1466_v11 }
 0x2a9   :  { %664 = vmatmul.bf16.gmra.mxu3 %v1946_v17 }
 0x2b9   :  { %669 = vmatmul.bf16.gmra.mxu3 %v1952_v20 }
 0x2c9   :  { %674 = vmatmul.bf16.gmra.mxu3 %v1937_v10 }
 0x2d9   :  { %679 = vmatmul.bf16.gmra.mxu3 %v1943_v12 }
 0x2e9   :  { %684 = vmatmul.bf16.gmra.mxu3 %v1948_v18 }
 0x2fc   :  { %v650_v17 = vpop.f32.mrf.mxu3 }
 0x304   :  { %v652_v10 = vpop.f32.mrf.mxu3 }
 0x305   :  { %v690_v20 = vpack.c.bf16 %v652_v10, %v650_v17 }
 0x307   :  { %774 = vmatmul.bf16.vlgmr.msrb.gmra.mxu0 %v690_v20 }
 0x30c   :  { %v655_v47 = vpop.f32.mrf.mxu3 }
 0x314   :  { %v657_v48 = vpop.f32.mrf.mxu3 }
 0x315   :  { %v691_v49 = vpack.c.bf16 %v657_v48, %v655_v47 }
 0x317   :  { %779 = vmatmul.bf16.gmra.mxu0 %v691_v49 }
 0x31c   :  { %v660_v50 = vpop.f32.mrf.mxu3 }
 0x324   :  { %v662_v51 = vpop.f32.mrf.mxu3 }
 0x325   :  { %v692_v52 = vpack.c.bf16 %v662_v51, %v660_v50 }
 0x327   :  { %784 = vmatmul.bf16.gmra.mxu0 %v692_v52 }
 0x32c   :  { %v665_v12 = vpop.f32.mrf.mxu3 }
 0x334   :  { %v667_v53 = vpop.f32.mrf.mxu3 }
 0x335   :  { %v693_v54 = vpack.c.bf16 %v667_v53, %v665_v12 }
 0x337   :  { %789 = vmatmul.bf16.gmra.mxu0 %v693_v54 }
 0x33c   :  { %v670_v55 = vpop.f32.mrf.mxu3 }
 0x344   :  { %v672_v56 = vpop.f32.mrf.mxu3 }
 0x345   :  { %v694_v58 = vpack.c.bf16 %v672_v56, %v670_v55 }
 0x347   :  { %794 = vmatmul.bf16.gmra.mxu0 %v694_v58 }
 0x34c   :  { %v675_v18 = vpop.f32.mrf.mxu3 }
 0x354   :  { %v677_v60 = vpop.f32.mrf.mxu3 }
 0x355   :  { %v695_v61 = vpack.c.bf16 %v677_v60, %v675_v18 }
 0x357   :  { %799 = vmatmul.bf16.gmra.mxu0 %v695_v61 }
 0x35c   :  { %v680_v0 = vpop.f32.mrf.mxu3 }
 0x364   :  { %v682_v3 = vpop.f32.mrf.mxu3 }
 0x365   :  { %v696_v4 = vpack.c.bf16 %v682_v3, %v680_v0 }
 0x367   :  { %804 = vmatmul.bf16.gmra.mxu0 %v696_v4 }
 0x36c   :  { %v685_v6 = vpop.f32.mrf.mxu3 }
 0x374   :  { %v687_v13 = vpop.f32.mrf.mxu3 }
 0x375   :  { %v697_v14 = vpack.c.bf16 %v687_v13, %v685_v6 }
 0x377   :  { %809 = vmatmul.bf16.gmra.mxu0 %v697_v14 }
 0x384   :  { %v775_v15 = vpop.f32.mrf.mxu0 }
 0x385   :  { %v776_v19 = vadd.f32 %v1528_v16, %v775_v15 }
 0x387   :  { %v815_v23 = vmax.f32 %v776_v19, 0.0 }
 0x38c   :  { %v777_v21 = vpop.f32.mrf.mxu0 }
 0x38d   :  { %v778_v22 = vadd.f32 %v1528_v16, %v777_v21 }
 0x38f   :  { %v816_v24 = vmax.f32 %v778_v22, 0.0 }
 0x391   :  { %v831_v25 = vpack.c.bf16 %v816_v24, %v815_v23 }
 0x393   :  { %915 = vmatmul.bf16.vlgmr.msrb.gmra.mxu1 %v831_v25 }
 0x394   :  { %v780_v26 = vpop.f32.mrf.mxu0 }
 0x395   :  { %v781_v27 = vadd.f32 %v1528_v16, %v780_v26 }
 0x397   :  { %v817_v30 = vmax.f32 %v781_v27, 0.0 }
 0x39c   :  { %v782_v28 = vpop.f32.mrf.mxu0 }
 0x39d   :  { %v783_v29 = vadd.f32 %v1528_v16, %v782_v28 }
 0x39f   :  { %v818_v31 = vmax.f32 %v783_v29, 0.0 }
 0x3a1   :  { %v832_v32 = vpack.c.bf16 %v818_v31, %v817_v30 }
 0x3a3   :  { %920 = vmatmul.bf16.gmra.mxu1 %v832_v32 }
 0x3a4   :  { %v785_v33 = vpop.f32.mrf.mxu0 }
 0x3a5   :  { %v786_v34 = vadd.f32 %v1528_v16, %v785_v33 }
 0x3a7   :  { %v819_v37 = vmax.f32 %v786_v34, 0.0 }
 0x3ac   :  { %v787_v35 = vpop.f32.mrf.mxu0 }
 0x3ad   :  { %v788_v36 = vadd.f32 %v1528_v16, %v787_v35 }
 0x3af   :  { %v820_v38 = vmax.f32 %v788_v36, 0.0 }
 0x3b1   :  { %v833_v39 = vpack.c.bf16 %v820_v38, %v819_v37 }
 0x3b3   :  { %925 = vmatmul.bf16.gmra.mxu1 %v833_v39 }
 0x3b4   :  { %v790_v40 = vpop.f32.mrf.mxu0 }
 0x3b5   :  { %v791_v41 = vadd.f32 %v1528_v16, %v790_v40 }
 0x3b7   :  { %v821_v44 = vmax.f32 %v791_v41, 0.0 }
 0x3bc   :  { %v792_v42 = vpop.f32.mrf.mxu0 }
 0x3bd   :  { %v793_v43 = vadd.f32 %v1528_v16, %v792_v42 }
 0x3bf   :  { %v822_v45 = vmax.f32 %v793_v43, 0.0 }
 0x3c1   :  { %v834_v46 = vpack.c.bf16 %v822_v45, %v821_v44  ;;  %v1489_v44 = vld [vmem:[#allocation14 + $0x38] sm:$0xff] }
 0x3c2   :  { %1046 = vmatpush.bf16.msra.mxu3 %v1489_v44 }
 0x3c3   :  { %930 = vmatmul.bf16.gmra.mxu1 %v834_v46  ;;  %v1488_v46 = vld [vmem:[#allocation14 + $0x30] sm:$0xff] }
 0x3c4   :  { %v795_v8 = vpop.f32.mrf.mxu0 }
 0x3c5   :  { %v796_v9 = vadd.f32 %v1528_v16, %v795_v8 }
 0x3c6   :  { %1047 = vmatpush.bf16.msra.mxu3 %v1488_v46 }
 0x3c7   :  { %v823_v10 = vmax.f32 %v796_v9, 0.0 }
 0x3cc   :  { %v797_v11 = vpop.f32.mrf.mxu0 }
 0x3cd   :  { %v798_v17 = vadd.f32 %v1528_v16, %v797_v11 }
 0x3cf   :  { %v824_v20 = vmax.f32 %v798_v17, 0.0  ;;  %v1487_v17 = vld [vmem:[#allocation14 + $0x28] sm:$0xff] }
 0x3d0   :  { %1048 = vmatpush.bf16.msra.mxu3 %v1487_v17 }
 0x3d1   :  { %v835_v47 = vpack.c.bf16 %v824_v20, %v823_v10 }
 0x3d3   :  { %935 = vmatmul.bf16.gmra.mxu1 %v835_v47 }
 0x3d4   :  { %v800_v48 = vpop.f32.mrf.mxu0 }
 0x3d5   :  { %v801_v49 = vadd.f32 %v1528_v16, %v800_v48  ;;  %v1486_v48 = vld [vmem:[#allocation14 + $0x20] sm:$0xff] }
 0x3d6   :  { %1049 = vmatpush.bf16.msra.mxu3 %v1486_v48 }
 0x3d7   :  { %v825_v52 = vmax.f32 %v801_v49, 0.0 }
 0x3dc   :  { %v802_v50 = vpop.f32.mrf.mxu0 }
 0x3dd   :  { %v803_v51 = vadd.f32 %v1528_v16, %v802_v50  ;;  %v1485_v50 = vld [vmem:[#allocation14 + $0x18] sm:$0xff] }
 0x3de   :  { %1050 = vmatpush.bf16.msra.mxu3 %v1485_v50 }
 0x3df   :  { %v826_v12 = vmax.f32 %v803_v51, 0.0  ;;  %v1484_v51 = vld [vmem:[#allocation14 + $0x10] sm:$0xff] }
 0x3e1   :  { %v836_v53 = vpack.c.bf16 %v826_v12, %v825_v52  ;;  %v1483_v52 = vld [vmem:[#allocation14 + $0x8] sm:$0xff]  ;;  %v221_v12 = vld [vmem:[#allocation7] sm:$0xf] }
 0x3e2   :  { %1051 = vmatpush.bf16.msra.mxu3 %v1484_v51 }
 0x3e3   :  { %940 = vmatmul.bf16.gmra.mxu1 %v836_v53  ;;  %v1482_v53 = vld [vmem:[#allocation14] sm:$0xff] }
 0x3e4   :  { %v805_v54 = vpop.f32.mrf.mxu0 }
 0x3e5   :  { %v806_v55 = vadd.f32 %v1528_v16, %v805_v54  ;;  %v1497_v54 = vld [vmem:[#allocation16 + $0x38] sm:$0xff] }
 0x3e6   :  { %1052 = vmatpush.bf16.msra.mxu3 %v1483_v52 }
 0x3e7   :  { %v827_v18 = vmax.f32 %v806_v55, 0.0  ;;  %v1496_v55 = vld [vmem:[#allocation16 + $0x30] sm:$0xff] }
 0x3ea   :  { %1053 = vmatpush.bf16.msra.mxu3 %v1482_v53 }
 0x3ec   :  { %v807_v56 = vpop.f32.mrf.mxu0 }
 0x3ed   :  { %v808_v58 = vadd.f32 %v1528_v16, %v807_v56  ;;  %v1495_v56 = vld [vmem:[#allocation16 + $0x28] sm:$0xff] }
 0x3ef   :  { %v828_v59 = vmax.f32 %v808_v58, 0.0  ;;  %v1494_v58 = vld [vmem:[#allocation16 + $0x20] sm:$0xff] }
 0x3f1   :  { %v837_v60 = vpack.c.bf16 %v828_v59, %v827_v18  ;;  %v1493_v18 = vld [vmem:[#allocation16 + $0x18] sm:$0xff]  ;;  %v1492_v59 = vld [vmem:[#allocation16 + $0x10] sm:$0xff] }
 0x3f3   :  { %945 = vmatmul.bf16.gmra.mxu1 %v837_v60 }
 0x3f4   :  { %v810_v61 = vpop.f32.mrf.mxu0 }
 0x3f5   :  { %v811_v62 = vadd.f32 %v1528_v16, %v810_v61 }
 0x3f7   :  { %v829_v1 = vmax.f32 %v811_v62, 0.0 }
 0x3fc   :  { %v812_v63 = vpop.f32.mrf.mxu0 }
 0x3fd   :  { %v813_v0 = vadd.f32 %v1528_v16, %v812_v63  ;;  %v1491_v63 = vld [vmem:[#allocation16 + $0x8] sm:$0xff] }
 0x3ff   :  { %v830_v2 = vmax.f32 %v813_v0, 0.0  ;;  %v1490_v0 = vld [vmem:[#allocation16] sm:$0xff] }
 0x401   :  { %v838_v3 = vpack.c.bf16 %v830_v2, %v829_v1  ;;  %v1530_v1 = vld [vmem:[%s1996_s12] ss:$0 sm:$0xff]  ;;  %s1799_s12 = smov [#allocation17]  }
 0x402   :  { %s1162_s0 = sshll.u32 %s1799_s12, 4  ;;  %s1163_s0 = int_to_ptr.vmem [resolvable:$true] %s1162_s0 }
 0x403   :  { %950 = vmatmul.bf16.gmra.mxu1 %v838_v3 }
 0x410   :  { %v916_v4 = vpop.f32.mrf.mxu1 }
 0x411   :  { %v917_v6 = vadd.f32 %v1529_v5, %v916_v4 }
 0x418   :  { %v918_v57 = vpop.f32.mrf.mxu1 }
 0x419   :  { %v919_v7 = vadd.f32 %v1529_v5, %v918_v57 }
 0x41b   :  { %v956_v13 = vpack.c.bf16 %v919_v7, %v917_v6  ;;  %v1142_v6 = vlaneseq }
 0x41d   :  { %v1143_v7 = vand.u32 127, %v1142_v6 }
 0x41f   :  { %vm1144_vm0 = vcmp.lt.s32.totalorder %v1143_v7, 4 }
 0x420   :  { %v921_v14 = vpop.f32.mrf.mxu1 }
 0x421   :  { %v922_v19 = vadd.f32 %v1529_v5, %v921_v14 }
 0x428   :  { %v923_v15 = vpop.f32.mrf.mxu1 }
 0x429   :  { %v924_v21 = vadd.f32 %v1529_v5, %v923_v15 }
 0x42b   :  { %v957_v22 = vpack.c.bf16 %v924_v21, %v922_v19 }
 0x430   :  { %v926_v23 = vpop.f32.mrf.mxu1 }
 0x431   :  { %v927_v24 = vadd.f32 %v1529_v5, %v926_v23 }
 0x438   :  { %v928_v16 = vpop.f32.mrf.mxu1 }
 0x439   :  { %v929_v25 = vadd.f32 %v1529_v5, %v928_v16 }
 0x43b   :  { %v958_v26 = vpack.c.bf16 %v929_v25, %v927_v24 }
 0x440   :  { %v931_v27 = vpop.f32.mrf.mxu1 }
 0x441   :  { %v932_v29 = vadd.f32 %v1529_v5, %v931_v27 }
 0x448   :  { %v933_v28 = vpop.f32.mrf.mxu1 }
 0x449   :  { %v934_v30 = vadd.f32 %v1529_v5, %v933_v28 }
 0x44b   :  { %v959_v31 = vpack.c.bf16 %v934_v30, %v932_v29 }
 0x450   :  { %v936_v32 = vpop.f32.mrf.mxu1 }
 0x451   :  { %v937_v47 = vadd.f32 %v1529_v5, %v936_v32 }
 0x458   :  { %v938_v33 = vpop.f32.mrf.mxu1 }
 0x459   :  { %v939_v10 = vadd.f32 %v1529_v5, %v938_v33 }
 0x45b   :  { %v960_v49 = vpack.c.bf16 %v939_v10, %v937_v47 }
 0x460   :  { %v941_v34 = vpop.f32.mrf.mxu1 }
 0x461   :  { %v942_v11 = vadd.f32 %v1529_v5, %v941_v34 }
 0x468   :  { %v943_v35 = vpop.f32.mrf.mxu1 }
 0x469   :  { %v944_v8 = vadd.f32 %v1529_v5, %v943_v35 }
 0x46b   :  { %v961_v20 = vpack.c.bf16 %v944_v8, %v942_v11 }
 0x470   :  { %v946_v36 = vpop.f32.mrf.mxu1 }
 0x471   :  { %v947_v45 = vadd.f32 %v1529_v5, %v946_v36 }
 0x478   :  { %v948_v37 = vpop.f32.mrf.mxu1 }
 0x479   :  { %v949_v42 = vadd.f32 %v1529_v5, %v948_v37 }
 0x47b   :  { %v962_v9 = vpack.c.bf16 %v949_v42, %v947_v45 }
 0x480   :  { %v951_v38 = vpop.f32.mrf.mxu1 }
 0x481   :  { %v952_v40 = vadd.f32 %v1529_v5, %v951_v38 }
 0x488   :  { %v953_v39 = vpop.f32.mrf.mxu1 }
 0x489   :  { %v954_v41 = vadd.f32 %v1529_v5, %v953_v39 }
 0x48b   :  { %v963_v43 = vpack.c.bf16 %v954_v41, %v952_v40 }
 0x48d   :  { %964 = vmatpush.bf16.msra.mxu2 %v963_v43 }
 0x491   :  { %965 = vmatpush.bf16.msra.mxu2 %v962_v9 }
 0x495   :  { %966 = vmatpush.bf16.msra.mxu2 %v961_v20 }
 0x499   :  { %967 = vmatpush.bf16.msra.mxu2 %v960_v49 }
 0x49d   :  { %968 = vmatpush.bf16.msra.mxu2 %v959_v31 }
 0x4a1   :  { %969 = vmatpush.bf16.msra.mxu2 %v958_v26 }
 0x4a5   :  { %970 = vmatpush.bf16.msra.mxu2 %v957_v22 }
 0x4a9   :  { %971 = vmatpush.bf16.msra.mxu2 %v956_v13  ;;  %v1531_v13 = vld [vmem:[%s1998_s14] ss:$0 sm:$0xff]  ;;  %s1164_s14 = sshll.u32 %s1999_s15, 4  ;;  %s1165_s14 = int_to_ptr.hbm [resolvable:$true] %s1164_s14 }
 0x4ac   :  { %972 = vmatmul.bf16.vlgmr.msra.gmra.mxu2 %v221_v12 }
 0x4ad   :  { %1129 = vmatpush.bf16.msrb.mxu2 %v1497_v54 }
 0x4b1   :  { %1130 = vmatpush.bf16.msrb.mxu2 %v1496_v55 }
 0x4b5   :  { %1131 = vmatpush.bf16.msrb.mxu2 %v1495_v56 }
 0x4b9   :  { %1132 = vmatpush.bf16.msrb.mxu2 %v1494_v58 }
 0x4bd   :  { %1133 = vmatpush.bf16.msrb.mxu2 %v1493_v18 }
 0x4c1   :  { %1134 = vmatpush.bf16.msrb.mxu2 %v1492_v59 }
 0x4c5   :  { %1135 = vmatpush.bf16.msrb.mxu2 %v1491_v63 }
 0x4c9   :  { %1136 = vmatpush.bf16.msrb.mxu2 %v1490_v0 }
 0x52f   :  { %v973_v60 = vpop.f32.mrf.mxu2 }
 0x530   :  { %v977_v61 = vpack.c.bf16 %v973_v60, %v973_v60 }
 0x532   :  { %1054 = vmatmul.bf16.vlgmr.msra.gmra.mxu3 %v977_v61 }
 0x537   :  { %v975_v62 = vpop.f32.mrf.mxu2 }
 0x5b5   :  { %v1055_v2 = vpop.f32.mrf.mxu3 }
 0x5b6   :  { %v1056_v3 = vadd.f32 %v1530_v1, %v1055_v2 }
 0x5b8   :  { %v1059_v4 = vmax.f32 %v1056_v3, 0.0 }
 0x5ba   :  { %v1060_v5 = vpack.c.bf16 %v1059_v4, %v1059_v4 }
 0x5bc   :  { %1137 = vmatmul.bf16.vlgmr.msrb.gmra.mxu2 %v1060_v5 }
 0x5bd   :  { %v1057_v57 = vpop.f32.mrf.mxu3 }
 0x63f   :  { %v1138_v14 = vpop.f32.mrf.mxu2 }
 0x640   :  { %v1139_v15 = vadd.f32 %v1531_v13, %v1138_v14 }
 0x642   :  { %v1145_v19 = vsel %vm1144_vm0, %v1139_v15, -1e+30 }
 0x643   :  { %1146 = vmax.xlane.f32.xlu0 %v1145_v19 }
 0x647   :  { %v1140_v21 = vpop.f32.mrf.mxu2 }
 0x6b6   :  { %v1147_v22 = vpop.xlane.xlu0 %1146 }
 0x6b7   :  { %v1148_v23 = vsub.f32 %v1145_v19, %v1147_v22 }
 0x6b9   :  { %v1149_v16 = vmul.f32 1.442695, %v1148_v23 }
 0x6bb   :  { %1532 = vpow2.f32 %v1149_v16 }
 0x6c1   :  { %v1533_v24 = vpop.eup %1532 }
 0x6c2   :  { %1151 = vadd.xlane.f32.xlu0 %v1533_v24 }
 0x735   :  { %v1152_v25 = vpop.xlane.xlu0 %1151 }
 0x736   :  { %1534 = vlog2.f32 %v1152_v25 }
 0x73c   :  { %v1535_v26 = vpop.eup %1534 }
 0x73d   :  { %v1154_v27 = vmul.f32 0.6931472, %v1535_v26 }
 0x73f   :  { %v1155_v28 = vsub.f32 %v1148_v23, %v1154_v27 }
 0x741   :  { %1156 = vst [vmem:[#allocation17] sm:$0xff] %v1155_v28 }
 0x742   :  { %1167 = dma.vmem_to_hbm [thread:$0]  %s1163_s0, 128, %s1165_s14, [#allocation4]  }
 0x743   :  { %1786 = dma.done.wait [#allocation4], 128  }
 0x744   :  { %1787 = vsyncadd [#allocation4], 4294967168 }
 0x745   :  { %1172 = vsyncpa [#allocation3], 1 }
 0x746   :  { %1173 = vsyncpa [#allocation6], 1 }
 0x747   :  { %1174 = vsyncpa [#allocation9], 1 }
 0x748   :  { %1175 = vsyncpa [#allocation12], 1 }
 0x749   :  { %1176 = vsyncpa [#allocation15], 1 }
 0x74a   :  { %1177 = vsyncpa [#allocation4], 1 }

</bundles_post_ra>
